<compile_context>
chip_gen: v6e
topology: v6e:2x2x1
jax: 0.10.0
libtpu: 0.0.40
codegen_flags: <defaults>
</compile_context>

<pallas_src>
import functools
import math

import jax
import jax.numpy as jnp
from jax import lax
from jax.experimental import pallas as pl
from jax.experimental.pallas import tpu as pltpu

# MXU input dtype (accumulation is always f32). Set to jnp.float32 for exact
# f32 parity with the PyTorch reference.
MATMUL_DTYPE = jnp.bfloat16
_LOG_2PI = math.log(2.0 * math.pi)
_VMEM_LIMIT_BYTES = 64 * 1024 * 1024


def _pick_row_tile(m, target=512):
    """Largest multiple-of-8 divisor of m that is <= target (else m itself)."""
    if m <= target:
        return m
    t = (target // 8) * 8
    while t >= 8:
        if m % t == 0:
            return t
        t -= 8
    return m


def _full2(a):
    """Whole-array 2-D BlockSpec (weights / biases resident per grid step)."""
    return pl.BlockSpec(a.shape, lambda *_: (0, 0))


def _mm(a, w):
    """MXU matmul: activation cast to the (pre-cast) weight dtype, f32 accum."""
    return jnp.dot(a.astype(w.dtype), w, preferred_element_type=jnp.float32)


def _layernorm(x, g, b, eps):
    mu = jnp.mean(x, axis=-1, keepdims=True)
    var = jnp.mean((x - mu) ** 2, axis=-1, keepdims=True)
    return (x - mu) * lax.rsqrt(var + eps) * g + b


# ----------------------------------------------------------------------------
# Kernel 1: embed matmul + pre-LN1 + QKV projection (row-tiled)
# ----------------------------------------------------------------------------
def _embed_ln_qkv_kernel(tok_ref, ew_ref, eb_ref, g_ref, b_ref,
                         wqkv_ref, bqkv_ref, z_ref, qkv_ref, *, eps):
    tok = tok_ref[...].astype(jnp.float32)
    z = _mm(tok, ew_ref[...]) + eb_ref[...]                       # (tm, D) f32
    zn = _layernorm(z, g_ref[...], b_ref[...], eps)
    qkv = _mm(zn, wqkv_ref[...]) + bqkv_ref[...]                  # (tm, 3D) f32
    z_ref[...] = z.astype(z_ref.dtype)
    qkv_ref[...] = qkv.astype(qkv_ref.dtype)                      # bf16 store


def embed_ln_qkv(tok, ew, eb, g, b, wqkv, bqkv, *, eps=1e-5, row_tile=512):
    M, d_in = tok.shape
    D = ew.shape[1]
    tm = _pick_row_tile(M, row_tile)
    return pl.pallas_call(
        functools.partial(_embed_ln_qkv_kernel, eps=eps),
        out_shape=(jax.ShapeDtypeStruct((M, D), jnp.float32),      # residual z
                   jax.ShapeDtypeStruct((M, 3 * D), MATMUL_DTYPE)),  # qkv
        grid=(M // tm,),
        in_specs=[pl.BlockSpec((tm, d_in), lambda i: (i, 0)),
                  _full2(ew), _full2(eb), _full2(g), _full2(b),
                  _full2(wqkv), _full2(bqkv)],
        out_specs=(pl.BlockSpec((tm, D), lambda i: (i, 0)),
                   pl.BlockSpec((tm, 3 * D), lambda i: (i, 0))),
        compiler_params=pltpu.CompilerParams(
            dimension_semantics=("parallel",),
            vmem_limit_bytes=_VMEM_LIMIT_BYTES),
    )(tok, ew, eb, g, b, wqkv, bqkv)


# ----------------------------------------------------------------------------
# Kernel 2: attention (context keys only) + out-proj + residual
#           + pre-LN2 + MLP + residual + head   (fused, per batch element)
# ----------------------------------------------------------------------------
def _attention_ctx(qkv, *, nheads, nc, dh, scale):
    """Context-only multi-head attention on a (S, 3D) qkv block."""
    D = nheads * dh
    outs = []
    for h in range(nheads):               # static unroll over heads
        q = qkv[:, h * dh:(h + 1) * dh]                            # (S, dh)
        k = qkv[:nc, D + h * dh:D + (h + 1) * dh]                  # (nc, dh)
        v = qkv[:nc, 2 * D + h * dh:2 * D + (h + 1) * dh]          # (nc, dh)
        s = lax.dot_general(q, k, (((1,), (1,)), ((), ())),
                            preferred_element_type=jnp.float32) * scale
        m = jnp.max(s, axis=-1, keepdims=True)
        p = jnp.exp(s - m)
        inv = pl.reciprocal(jnp.sum(p, axis=-1, keepdims=True), approx=True)
        o = jnp.dot(p.astype(qkv.dtype), v,
                    preferred_element_type=jnp.float32) * inv      # (S, dh) f32
        outs.append(o)
    return jnp.concatenate(outs, axis=-1)                          # (S, D) f32


def _encoder_block(qkv, z, wo, bo, ln_g, ln_b, w1, b1, w2, b2,
                   *, nheads, nc, dh, scale, eps):
    attn = _attention_ctx(qkv, nheads=nheads, nc=nc, dh=dh, scale=scale)
    z = z + _mm(attn, wo) + bo                                     # residual 1
    zn = _layernorm(z, ln_g, ln_b, eps)
    h = _mm(zn, w1) + b1
    h = jax.nn.gelu(h, approximate=True)
    return z + _mm(h, w2) + b2                                     # residual 2


def _encoder_head_loglik_kernel(qkv_ref, z_ref, yt_ref,
                                wo_ref, bo_ref, g2_ref, bb2_ref,
                                w1_ref, b1_ref, w2_ref, b2_ref,
                                hw_ref, hb_ref, o_ref,
                                *, nheads, nc, dh, scale, eps, dy):
    z = _encoder_block(qkv_ref[0], z_ref[0], wo_ref[...], bo_ref[...],
                       g2_ref[...], bb2_ref[...], w1_ref[...], b1_ref[...],
                       w2_ref[...], b2_ref[...],
                       nheads=nheads, nc=nc, dh=dh, scale=scale, eps=eps)
    zt = z[nc:, :]                                                 # (Nt, D)
    out = _mm(zt, hw_ref[...]) + hb_ref[...]                       # (Nt, 2*dy)
    mean = out[:, :dy]
    log_std = out[:, dy:]
    yt = yt_ref[0]                                                 # (Nt, dy)
    zz = (yt - mean) * jnp.exp(-log_std)
    lp = -0.5 * zz * zz - log_std - 0.5 * _LOG_2PI                 # (Nt, dy)
    # full in-kernel reduction -> per-batch scalar (lane-dense enough: 4 bytes)
    row = jnp.sum(lp, axis=-1, keepdims=True)                      # (Nt, 1)
    o_ref[0] = jnp.sum(row, axis=0, keepdims=True)                 # (1, 1)


def _encoder_head_predict_kernel(qkv_ref, z_ref,
                                 wo_ref, bo_ref, g2_ref, bb2_ref,
                                 w1_ref, b1_ref, w2_ref, b2_ref,
                                 hw_ref, hb_ref, o_ref,
                                 *, nheads, nc, dh, scale, eps, dy):
    z = _encoder_block(qkv_ref[0], z_ref[0], wo_ref[...], bo_ref[...],
                       g2_ref[...], bb2_ref[...], w1_ref[...], b1_ref[...],
                       w2_ref[...], b2_ref[...],
                       nheads=nheads, nc=nc, dh=dh, scale=scale, eps=eps)
    zt = z[nc:, :]                                                 # (Nt, D)
    out = _mm(zt, hw_ref[...]) + hb_ref[...]                       # (Nt, 2*dy)
    mean = out[:, :dy]
    std = jnp.exp(out[:, dy:])
    o_ref[0] = jnp.concatenate([mean, std], axis=-1)


def _encoder_common_specs(qkv, z, p):
    B, S, D3 = qkv.shape
    D = z.shape[-1]
    data_specs = [pl.BlockSpec((1, S, D3), lambda b: (b, 0, 0)),
                  pl.BlockSpec((1, S, D), lambda b: (b, 0, 0))]
    weight_specs = [_full2(p["wo"]), _full2(p["bo"]),
                    _full2(p["ln2_g"]), _full2(p["ln2_b"]),
                    _full2(p["w1"]), _full2(p["b1"]),
                    _full2(p["w2"]), _full2(p["b2"]),
                    _full2(p["head_w"]), _full2(p["head_b"])]
    weights = (p["wo"], p["bo"], p["ln2_g"], p["ln2_b"],
               p["w1"], p["b1"], p["w2"], p["b2"],
               p["head_w"], p["head_b"])
    return data_specs, weight_specs, weights


def encoder_head_loglik(qkv, z, yt, p, *, nheads, nc, eps=1e-5):
    B, S, _ = qkv.shape
    D = z.shape[-1]
    Nt = S - nc
    dy = yt.shape[-1]
    dh = D // nheads
    scale = 1.0 / math.sqrt(dh)
    data_specs, weight_specs, weights = _encoder_common_specs(qkv, z, p)
    return pl.pallas_call(
        functools.partial(_encoder_head_loglik_kernel, nheads=nheads, nc=nc,
                          dh=dh, scale=scale, eps=eps, dy=dy),
        out_shape=jax.ShapeDtypeStruct((B, 1, 1), jnp.float32),
        grid=(B,),
        in_specs=data_specs
                 + [pl.BlockSpec((1, Nt, dy), lambda b: (b, 0, 0))]
                 + weight_specs,
        out_specs=pl.BlockSpec((1, 1, 1), lambda b: (b, 0, 0)),
        compiler_params=pltpu.CompilerParams(
            dimension_semantics=("parallel",),
            vmem_limit_bytes=_VMEM_LIMIT_BYTES),
    )(qkv, z, yt, *weights)


def encoder_head_predict(qkv, z, p, *, nheads, nc, dy, eps=1e-5):
    B, S, _ = qkv.shape
    D = z.shape[-1]
    Nt = S - nc
    dh = D // nheads
    scale = 1.0 / math.sqrt(dh)
    data_specs, weight_specs, weights = _encoder_common_specs(qkv, z, p)
    return pl.pallas_call(
        functools.partial(_encoder_head_predict_kernel, nheads=nheads, nc=nc,
                          dh=dh, scale=scale, eps=eps, dy=dy),
        out_shape=jax.ShapeDtypeStruct((B, Nt, 2 * dy), jnp.float32),
        grid=(B,),
        in_specs=data_specs + weight_specs,
        out_specs=pl.BlockSpec((1, Nt, 2 * dy), lambda b: (b, 0, 0)),
        compiler_params=pltpu.CompilerParams(
            dimension_semantics=("parallel",),
            vmem_limit_bytes=_VMEM_LIMIT_BYTES),
    )(qkv, z, *weights)


# ----------------------------------------------------------------------------
# Parameters (deterministic synthetic init; matmul weights pre-cast to bf16)
# ----------------------------------------------------------------------------
def init_params(key, dx, dy, d_model, n_heads, d_ff):
    keys = jax.random.split(key, 6)

    def w(k, fan_in, shape):
        return (jax.random.normal(k, shape, jnp.float32)
                / jnp.sqrt(float(fan_in))).astype(MATMUL_DTYPE)

    d_in = dx + dy + 1  # x, y (zeroed for targets), is_target flag
    return {
        "n_heads": n_heads,
        # matmul weights pre-cast once (halves weight DMA + removes per-step casts)
        "embed_w": w(keys[0], d_in, (d_in, d_model)),
        "wqkv": w(keys[1], d_model, (d_model, 3 * d_model)),
        "wo": w(keys[2], d_model, (d_model, d_model)),
        "w1": w(keys[3], d_model, (d_model, d_ff)),
        "w2": w(keys[4], d_ff, (d_ff, d_model)),
        "head_w": w(keys[5], d_model, (d_model, 2 * dy)),
        # biases / LayerNorm params stay f32 (added in f32 accumulation path)
        "embed_b": jnp.zeros((1, d_model), jnp.float32),
        "ln1_g": jnp.ones((1, d_model), jnp.float32),
        "ln1_b": jnp.zeros((1, d_model), jnp.float32),
        "bqkv": jnp.zeros((1, 3 * d_model), jnp.float32),
        "bo": jnp.zeros((1, d_model), jnp.float32),
        "ln2_g": jnp.ones((1, d_model), jnp.float32),
        "ln2_b": jnp.zeros((1, d_model), jnp.float32),
        "b1": jnp.zeros((1, d_ff), jnp.float32),
        "b2": jnp.zeros((1, d_model), jnp.float32),
        "head_b": jnp.zeros((1, 2 * dy), jnp.float32),
    }


# ----------------------------------------------------------------------------
# BaseTransformer.forward : embedder -> encoder -> head
# ----------------------------------------------------------------------------
def base_transformer_forward(params, batch, predict=False):
    xc, yc = batch["xc"], batch["yc"]
    xt, yt = batch["xt"], batch["yt"]
    B, Nc, _ = xc.shape
    Nt = xt.shape[1]
    Dy = yc.shape[-1]
    S = Nc + Nt
    D = params["embed_w"].shape[1]
    H = params["n_heads"]

    # ---- Embedder input construction (cheap XLA glue) ----------------------
    ctx_in = jnp.concatenate(
        [xc, yc, jnp.zeros((B, Nc, 1), jnp.float32)], axis=-1)
    tgt_in = jnp.concatenate(
        [xt, jnp.zeros((B, Nt, Dy), jnp.float32),
         jnp.ones((B, Nt, 1), jnp.float32)], axis=-1)
    tok = jnp.concatenate([ctx_in, tgt_in], axis=1).reshape(B * S, -1)

    # ---- Kernel 1: fused embed + pre-LN1 + QKV projection ------------------
    z2d, qkv2d = embed_ln_qkv(tok, params["embed_w"], params["embed_b"],
                              params["ln1_g"], params["ln1_b"],
                              params["wqkv"], params["bqkv"])
    z = z2d.reshape(B, S, D)            # contiguous reshapes (free)
    qkv = qkv2d.reshape(B, S, 3 * D)

    # ---- Kernel 2: fused attention + out-proj + LN2 + MLP + head -----------
    if predict:
        out = encoder_head_predict(qkv, z, params, nheads=H, nc=Nc, dy=Dy)
        return out[..., :Dy], out[..., Dy:]

    per_batch = encoder_head_loglik(qkv, z, yt, params, nheads=H, nc=Nc)
    # per-task log-likelihood summed over points/dims, averaged over batch
    return jnp.sum(per_batch) / B


# ----------------------------------------------------------------------------
if __name__ == "__main__":
    key = jax.random.PRNGKey(0)
    B, Nc, Nt, Dx, Dy = 2, 8, 8, 2, 1
    d_model, n_heads, d_ff = 32, 4, 64

    k1, k2, k3, k4, kp = jax.random.split(key, 5)
    batch = {
        "xc": jax.random.normal(k1, (B, Nc, Dx), jnp.float32),
        "yc": jax.random.normal(k2, (B, Nc, Dy), jnp.float32),
        "xt": jax.random.normal(k3, (B, Nt, Dx), jnp.float32),
        "yt": jax.random.normal(k4, (B, Nt, Dy), jnp.float32),
    }
    params = init_params(kp, Dx, Dy, d_model, n_heads, d_ff)

    loglik = base_transformer_forward(params, batch, predict=False)
    mean, std = base_transformer_forward(params, batch, predict=True)
    jax.block_until_ready((loglik, mean, std))

    assert mean.shape == (B, Nt, Dy) and std.shape == (B, Nt, Dy)
    assert loglik.shape == ()
    assert bool(jnp.isfinite(loglik))
    assert bool(jnp.all(jnp.isfinite(mean))) and bool(jnp.all(std > 0))
    print("KERNEL_OK")
</pallas_src>

<mosaic_0001>
module attributes {stable_mosaic.version = 11 : i64} {
  func.func @_embed_ln_qkv_kernel(%arg0: i32, %arg1: memref<32x4xf32, #tpu.memory_space<vmem>>, %arg2: memref<4x32xbf16, #tpu.memory_space<vmem>>, %arg3: memref<1x32xf32, #tpu.memory_space<vmem>>, %arg4: memref<1x32xf32, #tpu.memory_space<vmem>>, %arg5: memref<1x32xf32, #tpu.memory_space<vmem>>, %arg6: memref<32x96xbf16, #tpu.memory_space<vmem>>, %arg7: memref<1x96xf32, #tpu.memory_space<vmem>>, %arg8: memref<32x32xf32, #tpu.memory_space<vmem>>, %arg9: memref<32x96xbf16, #tpu.memory_space<vmem>>) attributes {dimension_semantics = [#tpu.dimension_semantics<parallel>], iteration_bounds = array<i64: 1>, scalar_prefetch = 0 : i64, scratch_operands = 0 : i64, tpu.core_type = #tpu.core_type<tc>, window_params = [{transform_indices = @transform_0, window_bounds = array<i64: 32, 4>}, {pipeline_mode = #tpu.pipeline_mode<synchronous>, transform_indices = @transform_1, window_bounds = array<i64: 4, 32>}, {pipeline_mode = #tpu.pipeline_mode<synchronous>, transform_indices = @transform_2, window_bounds = array<i64: 1, 32>}, {pipeline_mode = #tpu.pipeline_mode<synchronous>, transform_indices = @transform_3, window_bounds = array<i64: 1, 32>}, {pipeline_mode = #tpu.pipeline_mode<synchronous>, transform_indices = @transform_4, window_bounds = array<i64: 1, 32>}, {pipeline_mode = #tpu.pipeline_mode<synchronous>, transform_indices = @transform_5, window_bounds = array<i64: 32, 96>}, {pipeline_mode = #tpu.pipeline_mode<synchronous>, transform_indices = @transform_6, window_bounds = array<i64: 1, 96>}, {transform_indices = @transform_7, window_bounds = array<i64: 32, 32>}, {transform_indices = @transform_8, window_bounds = array<i64: 32, 96>}]} {
    %c0 = arith.constant 0 : index
    %c0_0 = arith.constant 0 : index
    %0 = vector.load %arg1[%c0, %c0_0] : memref<32x4xf32, #tpu.memory_space<vmem>>, vector<32x4xf32>
    %c0_1 = arith.constant 0 : index
    %c0_2 = arith.constant 0 : index
    %1 = vector.load %arg2[%c0_1, %c0_2] : memref<4x32xbf16, #tpu.memory_space<vmem>>, vector<4x32xbf16>
    %2 = arith.truncf %0 : vector<32x4xf32> to vector<32x4xbf16>
    %cst = arith.constant dense<0.000000e+00> : vector<32x32xf32>
    %3 = tpu.matmul %2, %1, %cst {dimension_numbers = #tpu.dot_dimension_numbers<[1], [0], [0], [1], [0, 0, 1, 1], [], []>} : vector<32x4xbf16>, vector<4x32xbf16>, vector<32x32xf32> -> vector<32x32xf32>
    %c0_3 = arith.constant 0 : index
    %c0_4 = arith.constant 0 : index
    %4 = vector.load %arg3[%c0_3, %c0_4] : memref<1x32xf32, #tpu.memory_space<vmem>>, vector<1x32xf32>
    %5 = vector.broadcast %4 : vector<1x32xf32> to vector<32x32xf32>
    %6 = arith.addf %3, %5 : vector<32x32xf32>
    %c0_5 = arith.constant 0 : index
    %c0_6 = arith.constant 0 : index
    %7 = vector.load %arg4[%c0_5, %c0_6] : memref<1x32xf32, #tpu.memory_space<vmem>>, vector<1x32xf32>
    %c0_7 = arith.constant 0 : index
    %c0_8 = arith.constant 0 : index
    %8 = vector.load %arg5[%c0_7, %c0_8] : memref<1x32xf32, #tpu.memory_space<vmem>>, vector<1x32xf32>
    %cst_9 = arith.constant dense<0.000000e+00> : vector<32xf32>
    %9 = vector.multi_reduction <add>, %6, %cst_9 [1] : vector<32x32xf32> to vector<32xf32>
    %10 = vector.shape_cast %9 : vector<32xf32> to vector<32x1xf32>
    %cst_10 = arith.constant 3.200000e+01 : f32
    %11 = vector.broadcast %cst_10 : f32 to vector<32x1xf32>
    %12 = arith.divf %10, %11 : vector<32x1xf32>
    %13 = vector.broadcast %12 : vector<32x1xf32> to vector<32x32xf32>
    %14 = arith.subf %6, %13 : vector<32x32xf32>
    %15 = arith.mulf %14, %14 : vector<32x32xf32>
    %cst_11 = arith.constant dense<0.000000e+00> : vector<32xf32>
    %16 = vector.multi_reduction <add>, %15, %cst_11 [1] : vector<32x32xf32> to vector<32xf32>
    %17 = vector.shape_cast %16 : vector<32xf32> to vector<32x1xf32>
    %cst_12 = arith.constant 3.200000e+01 : f32
    %18 = vector.broadcast %cst_12 : f32 to vector<32x1xf32>
    %19 = arith.divf %17, %18 : vector<32x1xf32>
    %20 = vector.broadcast %12 : vector<32x1xf32> to vector<32x32xf32>
    %21 = arith.subf %6, %20 : vector<32x32xf32>
    %cst_13 = arith.constant 9.99999974E-6 : f32
    %22 = vector.broadcast %cst_13 : f32 to vector<32x1xf32>
    %23 = arith.addf %19, %22 : vector<32x1xf32>
    %24 = math.rsqrt %23 : vector<32x1xf32>
    %25 = vector.broadcast %24 : vector<32x1xf32> to vector<32x32xf32>
    %26 = arith.mulf %21, %25 : vector<32x32xf32>
    %27 = vector.broadcast %7 : vector<1x32xf32> to vector<32x32xf32>
    %28 = arith.mulf %26, %27 : vector<32x32xf32>
    %29 = vector.broadcast %8 : vector<1x32xf32> to vector<32x32xf32>
    %30 = arith.addf %28, %29 : vector<32x32xf32>
    %c0_14 = arith.constant 0 : index
    %c0_15 = arith.constant 0 : index
    %31 = vector.load %arg6[%c0_14, %c0_15] : memref<32x96xbf16, #tpu.memory_space<vmem>>, vector<32x96xbf16>
    %32 = arith.truncf %30 : vector<32x32xf32> to vector<32x32xbf16>
    %cst_16 = arith.constant dense<0.000000e+00> : vector<32x96xf32>
    %33 = tpu.matmul %32, %31, %cst_16 {dimension_numbers = #tpu.dot_dimension_numbers<[1], [0], [0], [1], [0, 0, 1, 1], [], []>} : vector<32x32xbf16>, vector<32x96xbf16>, vector<32x96xf32> -> vector<32x96xf32>
    %c0_17 = arith.constant 0 : index
    %c0_18 = arith.constant 0 : index
    %34 = vector.load %arg7[%c0_17, %c0_18] : memref<1x96xf32, #tpu.memory_space<vmem>>, vector<1x96xf32>
    %35 = vector.broadcast %34 : vector<1x96xf32> to vector<32x96xf32>
    %36 = arith.addf %33, %35 : vector<32x96xf32>
    %c0_19 = arith.constant 0 : index
    %c0_20 = arith.constant 0 : index
    %37 = vector.load %arg8[%c0_19, %c0_20] : memref<32x32xf32, #tpu.memory_space<vmem>>, vector<32x32xf32>
    tpu.vector_store %arg8[%c0_19, %c0_20], %6 {strides = array<i32>} : memref<32x32xf32, #tpu.memory_space<vmem>>, vector<32x32xf32>,
    %38 = arith.truncf %36 : vector<32x96xf32> to vector<32x96xbf16>
    %c0_21 = arith.constant 0 : index
    %c0_22 = arith.constant 0 : index
    %39 = vector.load %arg9[%c0_21, %c0_22] : memref<32x96xbf16, #tpu.memory_space<vmem>>, vector<32x96xbf16>
    tpu.vector_store %arg9[%c0_21, %c0_22], %38 {strides = array<i32>} : memref<32x96xbf16, #tpu.memory_space<vmem>>, vector<32x96xbf16>,
    return
  }
  func.func @transform_0(%arg0: i32) -> (i32, i32) {
    %c0_i32 = arith.constant 0 : i32
    %c0_i32_0 = arith.constant 0 : i32
    return %arg0, %c0_i32 : i32, i32
  }
  func.func @transform_1(%arg0: i32) -> (i32, i32) {
    %c0_i32 = arith.constant 0 : i32
    %c0_i32_0 = arith.constant 0 : i32
    %c0_i32_1 = arith.constant 0 : i32
    return %c0_i32, %c0_i32_0 : i32, i32
  }
  func.func @transform_2(%arg0: i32) -> (i32, i32) {
    %c0_i32 = arith.constant 0 : i32
    %c0_i32_0 = arith.constant 0 : i32
    %c0_i32_1 = arith.constant 0 : i32
    return %c0_i32, %c0_i32_0 : i32, i32
  }
  func.func @transform_3(%arg0: i32) -> (i32, i32) {
    %c0_i32 = arith.constant 0 : i32
    %c0_i32_0 = arith.constant 0 : i32
    %c0_i32_1 = arith.constant 0 : i32
    return %c0_i32, %c0_i32_0 : i32, i32
  }
  func.func @transform_4(%arg0: i32) -> (i32, i32) {
    %c0_i32 = arith.constant 0 : i32
    %c0_i32_0 = arith.constant 0 : i32
    %c0_i32_1 = arith.constant 0 : i32
    return %c0_i32, %c0_i32_0 : i32, i32
  }
  func.func @transform_5(%arg0: i32) -> (i32, i32) {
    %c0_i32 = arith.constant 0 : i32
    %c0_i32_0 = arith.constant 0 : i32
    %c0_i32_1 = arith.constant 0 : i32
    return %c0_i32, %c0_i32_0 : i32, i32
  }
  func.func @transform_6(%arg0: i32) -> (i32, i32) {
    %c0_i32 = arith.constant 0 : i32
    %c0_i32_0 = arith.constant 0 : i32
    %c0_i32_1 = arith.constant 0 : i32
    return %c0_i32, %c0_i32_0 : i32, i32
  }
  func.func @transform_7(%arg0: i32) -> (i32, i32) {
    %c0_i32 = arith.constant 0 : i32
    %c0_i32_0 = arith.constant 0 : i32
    return %arg0, %c0_i32 : i32, i32
  }
  func.func @transform_8(%arg0: i32) -> (i32, i32) {
    %c0_i32 = arith.constant 0 : i32
    %c0_i32_0 = arith.constant 0 : i32
    return %arg0, %c0_i32 : i32, i32
  }
}

</mosaic_0001>

<bundles_post_ra>
// kernel: tpu_custom_call.1
= control target key start
LH: loop header
LB: loop body
LE: loop exit
PB: predicated region body
PF: predicated region fallthrough
CT: control target
= control target key end

     0   :  { %14 = vsyncpa [#allocation3], 0  ;;  %vm52_vm0 = vcmask 1041408   ;;  %vm45_vm1 = vcmask 31744   ;;  %s526_s0 = inlined_call_operand.vmem [shape: f32[32,4], index: 0, kind: input, shape index: {}]   ;;  %s527_s1 = inlined_call_operand.vmem [shape: bf16[4,32], index: 1, kind: input, shape index: {}]   ;;  %s528_s2 = inlined_call_operand.vmem [shape: f32[1,32], index: 2, kind: input, shape index: {}]   ;;  %s529_s3 = inlined_call_operand.vmem [shape: f32[1,32], index: 3, kind: input, shape index: {}]   ;;  %s530_s4 = inlined_call_operand.vmem [shape: f32[1,32], index: 4, kind: input, shape index: {}]   ;;  %s531_s5 = inlined_call_operand.vmem [shape: bf16[32,96], index: 5, kind: input, shape index: {}]   ;;  %s532_s6 = inlined_call_operand.vmem [shape: f32[1,96], index: 6, kind: input, shape index: {}]   ;;  %s533_s7 = inlined_call_operand.hbm [shape: f32[32,32], index: 7, kind: output, shape index: {0}]   ;;  %s534_s8 = inlined_call_operand.hbm [shape: bf16[32,96], index: 8, kind: output, shape index: {1}]  }
   0x1   :  { %v35_v0 = vld [vmem:[%s527_s1] sm:$0x3]  ;;  %v32_v2 = vld [vmem:[%s526_s0 + $0x8] sm:$0xff]  ;;  %v33_v5 = vld [vmem:[%s526_s0 + $0x10] sm:$0xff] }
   0x2   :  { %v31_v1 = vld [vmem:[%s526_s0] sm:$0xff]  ;;  %357 = vmatprep.subr.msk.bf16.mxu0 %vm52_vm0, %v35_v0  ;;  %v54_v3 = vsel %vm52_vm0, %v35_v0, 0  ;;  %v34_v6 = vld [vmem:[%s526_s0 + $0x18] sm:$0xff] }
   0x3   :  { %v36_v4 = vpack.c.bf16 %v32_v2, %v31_v1  ;;  %344 = vmatpush3.bf16.msra.mxu0 %v54_v3  ;;  %v37_v7 = vpack.c.bf16 %v34_v6, %v33_v5 }
   0x5   :  { %345 = vmatprep.mubr.msk.bf16.mxu0 %vm45_vm1, %v36_v4 }
   0x6   :  { %15 = vsyncpa [#allocation5], 0  ;;  %346 = vmatmul.mubr.msk.bf16.vlgmr.msra.gmra.mxu0 %vm45_vm1, %v37_v7  ;;  %v318_v8 = vld [vmem:[%s528_s2] ss:$0 sm:$0xff]  ;;  %vm107_vm2 = vcmask 261120   ;;  %v364_v41 = vld [vmem:[%s531_s5 + $0x8] sm:$0xff]  }
   0x7   :  { %v365_v42 = vld [vmem:[%s531_s5] sm:$0xff]   ;;  %349 = vmatprep.subr.bf16.mxu1 %v364_v41 }
   0x8   :  { %350 = vmatpush3.bf16.msra.mxu1 %v364_v41  ;;  %v321_v57 = vld [vmem:[%s529_s3] ss:$0 sm:$0xff]  ;;  %s418_s3 = smov [#allocation2]  }
   0x9   :  { %351 = vmatprep.subr.bf16.mxu1 %v365_v42  ;;  %v322_v62 = vld [vmem:[%s530_s4] ss:$0 sm:$0xff]  ;;  %s291_s21 = sshll.u32 %s418_s3, 4  ;;  %s292_s21 = int_to_ptr.vmem [resolvable:$true] %s291_s21 }
   0xa   :  { %s374_s4 = scalar_lea.vmem %s292_s21, 512  ;;  %p379_p1 = scmp.lt.s32.totalorder %s292_s21, %s292_s21 }
   0xb   :  { %p375_p0 = scmp.ne.s32.totalorder %s292_s21, %s374_s4  ;;  %p380_p2 = scmp.lt.s32.totalorder %s374_s4, %s374_s4 }
   0xc   :  { %352 = vmatpush3.bf16.msra.mxu1 %v365_v42 }
   0xd   :  { %p381_p3 = por %p380_p2, %p379_p1 }
   0xf   :  { %p382_p4 = pnand %p381_p3, %p375_p0 }
  0xc6   :  { %v347_v9 = vpop.f32.mrf.mxu0 }
  0xc7   :  { %v99_v10 = vadd.f32 %v347_v9, %v318_v8 }
  0xc8   :  { %v90_v11 = vpop.f32.mrf.mxu0 }
  0xc9   :  { %263 = vst.msk [vmem:[#allocation2 + $0x10] sm:$0xff] %vm107_vm2, %v99_v10  ;;  %v91_v12 = vadd.f32 %v318_v8, %v90_v11  ;;  %v114_v13 = vsel %vm107_vm2, %v99_v10, 0.0 }
  0xca   :  { %115 = vadd.xlane.f32.xlu1 %v114_v13  ;;  %v348_v14 = vpop.f32.mrf.mxu0 }
  0xcb   :  { %261 = vst.msk [vmem:[#allocation2] sm:$0xff] %vm107_vm2, %v91_v12  ;;  %v102_v15 = vadd.f32 %v348_v14, %v318_v8  ;;  %v108_v16 = vsel %vm107_vm2, %v91_v12, 0.0 }
  0xcc   :  { %v93_v17 = vpop.f32.mrf.mxu0  ;;  %109 = vadd.xlane.f32.xlu0 %v108_v16 }
  0xcd   :  { %264 = vst.msk [vmem:[#allocation2 + $0x18] sm:$0xff] %vm107_vm2, %v102_v15  ;;  %v94_v18 = vadd.f32 %v318_v8, %v93_v17  ;;  %v117_v19 = vsel %vm107_vm2, %v102_v15, 0.0 }
  0xce   :  { %118 = vadd.xlane.f32.xlu1 %v117_v19 }
  0xcf   :  { %262 = vst.msk [vmem:[#allocation2 + $0x8] sm:$0xff] %vm107_vm2, %v94_v18  ;;  %v111_v20 = vsel %vm107_vm2, %v94_v18, 0.0 }
  0xd0   :  { %112 = vadd.xlane.f32.xlu0 %v111_v20 }
 0x153   :  { %v116_v21 = vpop.xlane.xlu1 %115 }
 0x154   :  { %v123_v22 = vmul.f32 0.03125, %v116_v21 }
 0x155   :  { %v110_v23 = vpop.xlane.xlu0 %109 }
 0x156   :  { %v121_v24 = vmul.f32 0.03125, %v110_v23  ;;  %v127_v26 = vsub.f32 %v99_v10, %v123_v22 }
 0x157   :  { %v119_v25 = vpop.xlane.xlu1 %118 }
 0x158   :  { %v125_v27 = vsub.f32 %v91_v12, %v121_v24  ;;  %v124_v28 = vmul.f32 0.03125, %v119_v25  ;;  %v131_v35 = vmul.f32 %v127_v26, %v127_v26 }
 0x159   :  { %v113_v29 = vpop.xlane.xlu0 %112 }
 0x15a   :  { %v122_v30 = vmul.f32 0.03125, %v113_v29  ;;  %v129_v31 = vmul.f32 %v125_v27, %v125_v27  ;;  %v128_v32 = vsub.f32 %v102_v15, %v124_v28  ;;  %v139_v37 = vsel %vm107_vm2, %v131_v35, 0.0 }
 0x15c   :  { %v126_v33 = vsub.f32 %v94_v18, %v122_v30  ;;  %v133_v34 = vsel %vm107_vm2, %v129_v31, 0.0  ;;  %v132_v39 = vmul.f32 %v128_v32, %v128_v32 }
 0x15d   :  { %134 = vadd.xlane.f32.xlu0 %v133_v34 }
 0x15e   :  { %v130_v36 = vmul.f32 %v126_v33, %v126_v33  ;;  %v142_v40 = vsel %vm107_vm2, %v132_v39, 0.0 }
 0x160   :  { %v136_v38 = vsel %vm107_vm2, %v130_v36, 0.0 }
 0x161   :  { %140 = vadd.xlane.f32.xlu0 %v139_v37  ;;  %137 = vadd.xlane.f32.xlu1 %v136_v38 }
 0x165   :  { %143 = vadd.xlane.f32.xlu1 %v142_v40 }
 0x1e6   :  { %v135_v43 = vpop.xlane.xlu0 %134 }
 0x1e7   :  { %v145_v44 = vmul.f32 0.03125, %v135_v43 }
 0x1e9   :  { %v149_v45 = vadd.f32 1e-05, %v145_v44 }
 0x1ea   :  { %v138_v46 = vpop.xlane.xlu1 %137  ;;  %v141_v47 = vpop.xlane.xlu0 %140 }
 0x1eb   :  { %366 = vrsqrt.f32 %v149_v45  ;;  %v146_v48 = vmul.f32 0.03125, %v138_v46  ;;  %v147_v49 = vmul.f32 0.03125, %v141_v47 }
 0x1ed   :  { %v150_v50 = vadd.f32 1e-05, %v146_v48  ;;  %v151_v51 = vadd.f32 1e-05, %v147_v49 }
 0x1ee   :  { %v144_v52 = vpop.xlane.xlu1 %143 }
 0x1ef   :  { %368 = vrsqrt.f32 %v150_v50  ;;  %v148_v53 = vmul.f32 0.03125, %v144_v52 }
 0x1f0   :  { %370 = vrsqrt.f32 %v151_v51 }
 0x1f1   :  { %v152_v54 = vadd.f32 1e-05, %v148_v53 }
 0x1f3   :  { %372 = vrsqrt.f32 %v152_v54 }
 0x1f8   :  { %v367_v55 = vpop.eup %366 }
 0x1f9   :  { %v157_v56 = vmul.f32 %v367_v55, %v125_v27 }
 0x1fb   :  { %v167_v61 = vmul.f32 %v321_v57, %v157_v56 }
 0x1fc   :  { %v369_v58 = vpop.eup %368 }
 0x1fd   :  { %v371_v59 = vpop.eup %370  ;;  %v158_v60 = vmul.f32 %v369_v58, %v126_v33  ;;  %v177_v2 = vadd.f32 %v322_v62, %v167_v61 }
 0x1fe   :  { %v159_v63 = vmul.f32 %v371_v59, %v127_v26 }
 0x1ff   :  { %v168_v0 = vmul.f32 %v321_v57, %v158_v60 }
 0x200   :  { %v373_v1 = vpop.eup %372  ;;  %v169_v5 = vmul.f32 %v321_v57, %v159_v63 }
 0x201   :  { %v178_v3 = vadd.f32 %v322_v62, %v168_v0  ;;  %v160_v4 = vmul.f32 %v373_v1, %v128_v32 }
 0x202   :  { %v179_v8 = vadd.f32 %v322_v62, %v169_v5 }
 0x203   :  { %v185_v6 = vpack.c.bf16 %v178_v3, %v177_v2  ;;  %v170_v7 = vmul.f32 %v321_v57, %v160_v4 }
 0x205   :  { %353 = vmatprep.mubr.msk.bf16.mxu1 %vm107_vm2, %v185_v6  ;;  %v180_v9 = vadd.f32 %v322_v62, %v170_v7 }
 0x207   :  { %v186_v10 = vpack.c.bf16 %v180_v9, %v179_v8 }
 0x209   :  { %354 = vmatmul.mubr.msk.bf16.vlgmr.msra.gmra.mxu1 %vm107_vm2, %v186_v10 }
 0x20a   :  { %385 = shalt.err (!%p382_p4)
}
 0x20b   :  { %s419_s22 = smov 128   ;;  %s420_s23 = smov 8   ;;  %v323_v11 = vld [vmem:[%s532_s6] ss:$0 sm:$0xff]  ;;  %vm281_vm3 = vcmask 781312  }
 0x20c   :  { %297 = dma.vmem_to_hbm [thread:$0]  %s292_s21, 512, %s533_s7, [#allocation3], %s419_s22, %s419_s22, %s420_s23  }
 0x20d   :  { %s421_s28 = smov [#allocation4]  }
 0x20e   :  { %s303_s29 = sshll.u32 %s421_s28, 4  ;;  %s304_s29 = int_to_ptr.vmem [resolvable:$true] %s303_s29 }
 0x20f   :  { %s394_s6 = scalar_lea.vmem %s304_s29, 256  ;;  %p399_p6 = scmp.lt.s32.totalorder %s304_s29, %s304_s29 }
 0x210   :  { %p395_p5 = scmp.ne.s32.totalorder %s304_s29, %s394_s6  ;;  %p400_p7 = scmp.lt.s32.totalorder %s394_s6, %s394_s6 }
 0x212   :  { %p401_p8 = por %p400_p7, %p399_p6 }
 0x214   :  { %p402_p9 = pnand %p401_p8, %p395_p5 }
 0x2c9   :  { %v355_v12 = vpop.f32.mrf.mxu1 }
 0x2ca   :  { %v255_v13 = vadd.f32 %v355_v12, %v323_v11 }
 0x2cb   :  { %v246_v14 = vpop.f32.mrf.mxu1 }
 0x2cc   :  { %v334_v15 = vpack.c.bf16 %v255_v13, %v255_v13  ;;  %v247_v16 = vadd.f32 %v323_v11, %v246_v14 }
 0x2cd   :  { %v356_v17 = vpop.f32.mrf.mxu1 }
 0x2ce   :  { %284 = vst.msk [vmem:[#allocation4 + $0x8] sm:$0xf] %vm281_vm3, %v334_v15  ;;  %v332_v18 = vpack.c.bf16 %v247_v16, %v247_v16  ;;  %v258_v19 = vadd.f32 %v356_v17, %v323_v11 }
 0x2cf   :  { %v249_v20 = vpop.f32.mrf.mxu1 }
 0x2d0   :  { %282 = vst.msk [vmem:[#allocation4] sm:$0xf] %vm281_vm3, %v332_v18  ;;  %v335_v21 = vpack.c.bf16 %v258_v19, %v258_v19  ;;  %v250_v22 = vadd.f32 %v323_v11, %v249_v20 }
 0x2d2   :  { %285 = vst.msk [vmem:[#allocation4 + $0xc] sm:$0xf] %vm281_vm3, %v335_v21  ;;  %v333_v23 = vpack.c.bf16 %v250_v22, %v250_v22 }
 0x2d4   :  { %283 = vst.msk [vmem:[#allocation4 + $0x4] sm:$0xf] %vm281_vm3, %v333_v23 }
 0x2d5   :  { %405 = shalt.err (!%p402_p9)
}
 0x2d6   :  { %s422_s7 = smov 64   ;;  %s423_s30 = smov 4  }
 0x2d7   :  { %309 = dma.vmem_to_hbm [thread:$0]  %s304_s29, 256, %s534_s8, [#allocation5], %s422_s7, %s422_s7, %s423_s30  }
 0x2d8   :  { %414 = dma.done.wait [#allocation3], 512  }
 0x2d9   :  { %415 = vsyncadd [#allocation3], 4294966784 }
 0x2da   :  { %416 = dma.done.wait [#allocation5], 256  }
 0x2db   :  { %417 = vsyncadd [#allocation5], 4294967040 }
 0x2dc   :  { %316 = vsyncpa [#allocation3], 1 }
 0x2dd   :  { %317 = vsyncpa [#allocation5], 1 }

</bundles_post_ra>
